<compile_context>
chip_gen: v7x
topology: tpu7x:2x2x1
jax: 0.10.0
libtpu: 0.0.40
codegen_flags: <defaults>
</compile_context>

<pallas_src>
import functools

import jax
import jax.numpy as jnp
from jax.experimental import pallas as pl
from jax.experimental.pallas import tpu as pltpu


def _round_up(x, m):
    return (x + m - 1) // m * m


def _vmem_capacity_bytes():
    try:
        return int(pltpu.get_tpu_info().vmem_capacity_bytes)
    except Exception:
        return 64 << 20  # conservative fallback (v7x per-TC VMEM)


def _pick_tm(M, itemsize, requested=512):
    """Row tile: big enough to beat the weight-stream roofline, aligned for
    sublane packing, and leaving >=2 row tiles when M allows (v7x: 2 TCs)."""
    align = 16 if itemsize < 4 else 8
    tm = max(align, min(requested, _round_up(M, align)))
    tm = _round_up(tm, align)
    while tm > 256 and -(-M // tm) < 2:
        tm = _round_up(max(align, tm // 2), align)
    return tm


def _pad_rows(x2d, M_pad):
    M = x2d.shape[0]
    if M_pad != M:
        x2d = jnp.pad(x2d, ((0, M_pad - M), (0, 0)))
    return x2d


def _pad_ff(w1, b1, w2):
    """Zero-pad d_ff to a multiple of 128 (exact: relu of padded cols is 0 and
    flows through zero w2 rows)."""
    d_ff = w1.shape[1]
    d_ff_pad = _round_up(d_ff, 128)
    if d_ff_pad != d_ff:
        pad = d_ff_pad - d_ff
        w1 = jnp.pad(w1, ((0, 0), (0, pad)))
        b1 = jnp.pad(b1, ((0, pad),))
        w2 = jnp.pad(w2, ((0, pad), (0, 0)))
    return w1, b1, w2, d_ff_pad


# ---------------------------------------------------------------------------
# PRIMARY PATH: fully fused encoder (N layers + LayerNorm) in one pallas_call
# ---------------------------------------------------------------------------
def _encoder_fused_kernel(x_ref, w1_ref, b1_ref, w2_ref, b2_ref, a_ref, bln_ref,
                          o_ref, *, num_layers, eps, d_model):
    x = x_ref[...]                       # native dtype (bf16 stays bf16)
    xf = x.astype(jnp.float32)
    for _ in range(num_layers):
        h = jnp.dot(x, w1_ref[...], preferred_element_type=jnp.float32)
        h = jnp.maximum(h + b1_ref[...].astype(jnp.float32), 0.0)
        # TODO(synk): training-mode dropout (pltpu.prng_random_bits mask) not
        # emitted; eval-mode dropout is the identity.
        xf = jnp.dot(h.astype(w2_ref.dtype), w2_ref[...],
                     preferred_element_type=jnp.float32)
        xf = xf + b2_ref[...].astype(jnp.float32)
        x = xf.astype(x_ref.dtype)       # next-layer matmul input in native dtype
    # Fused final LayerNorm on the f32 result already in VMEM:
    #   a_2 * (x - mean) / (std + eps) + b_2, std unbiased (ddof=1)
    mean = jnp.mean(xf, axis=-1, keepdims=True)
    xc = xf - mean
    std = jnp.sqrt(jnp.sum(xc * xc, axis=-1, keepdims=True) / (d_model - 1))
    y = (a_ref[...].astype(jnp.float32) * xc / (std + eps)
         + bln_ref[...].astype(jnp.float32))
    o_ref[...] = y.astype(o_ref.dtype)


def _fused_vmem_bytes(tm, d_model, d_ff_pad, itemsize):
    weights = (2 * d_model * d_ff_pad + d_ff_pad + 3 * d_model) * itemsize  # single-buffered
    act_tiles = 2 * (tm * d_model * itemsize) * 2                            # x + out, double-buffered
    f32_tmp = tm * d_ff_pad * 4 + 2 * tm * d_model * 4                        # h + xf temporaries
    return int((weights + act_tiles + f32_tmp) * 1.25) + (2 << 20)


def _encoder_fused(x2d, M, M_pad, tm, w1, b1, w2, b2, ln_a, ln_b, *,
                   num_layers, eps, vmem_limit):
    d_model = x2d.shape[1]
    d_ff_pad = w1.shape[1]
    out2d = pl.pallas_call(
        functools.partial(_encoder_fused_kernel, num_layers=num_layers,
                          eps=eps, d_model=d_model),
        out_shape=jax.ShapeDtypeStruct((M_pad, d_model), x2d.dtype),
        grid_spec=pltpu.PrefetchScalarGridSpec(
            num_scalar_prefetch=0,
            grid=(M_pad // tm,),
            in_specs=[
                pl.BlockSpec((tm, d_model), lambda i: (i, 0)),        # x rows (streamed)
                pl.BlockSpec((d_model, d_ff_pad), lambda i: (0, 0)),  # w1 (VMEM-resident)
                pl.BlockSpec((1, d_ff_pad), lambda i: (0, 0)),        # b1
                pl.BlockSpec((d_ff_pad, d_model), lambda i: (0, 0)),  # w2 (VMEM-resident)
                pl.BlockSpec((1, d_model), lambda i: (0, 0)),         # b2
                pl.BlockSpec((1, d_model), lambda i: (0, 0)),         # ln a_2
                pl.BlockSpec((1, d_model), lambda i: (0, 0)),         # ln b_2
            ],
            out_specs=pl.BlockSpec((tm, d_model), lambda i: (i, 0)),
        ),
        compiler_params=pltpu.CompilerParams(
            dimension_semantics=("parallel",),
            vmem_limit_bytes=vmem_limit,
        ),
    )(x2d, w1, b1.reshape(1, -1), w2, b2.reshape(1, -1),
      ln_a.reshape(1, -1), ln_b.reshape(1, -1))
    return out2d[:M] if M_pad != M else out2d


# ---------------------------------------------------------------------------
# FALLBACK PATH: per-layer FFN with d_ff tiling + separate LayerNorm
# ---------------------------------------------------------------------------
def _ffn_kernel(x_ref, w1_ref, b1_ref, w2_ref, b2_ref, o_ref, acc_ref):
    kf = pl.program_id(1)

    @pl.when(kf == 0)
    def _():
        acc_ref[...] = jnp.zeros_like(acc_ref)

    h = jnp.dot(x_ref[...], w1_ref[...], preferred_element_type=jnp.float32)
    h = jnp.maximum(h + b1_ref[...].astype(jnp.float32), 0.0)
    acc_ref[...] += jnp.dot(h.astype(w2_ref.dtype), w2_ref[...],
                            preferred_element_type=jnp.float32)

    @pl.when(kf == pl.num_programs(1) - 1)
    def _():
        o_ref[...] = (acc_ref[...] + b2_ref[...].astype(jnp.float32)).astype(o_ref.dtype)


def _pick_tff(d_ff_pad, requested):
    tff = min(_round_up(requested, 128), d_ff_pad)
    while d_ff_pad % tff != 0:
        tff -= 128
    return max(tff, 128)


def _ffn_tiled_vmem_bytes(tm, tff, d_model, itemsize):
    dbl = 2 * (tm * d_model       # x tile
               + d_model * tff    # w1 chunk
               + tff              # b1 chunk
               + tff * d_model    # w2 chunk
               + tm * d_model)    # out tile
    single = d_model               # b2 (grid-invariant)
    f32 = tm * d_model * 4 + tm * tff * 4   # acc scratch + h intermediate
    return int(((dbl + single) * itemsize + f32) * 1.25) + (2 << 20)


def _positionwise_ff_tiled(x2d, M, M_pad, tm, w1, b1, w2, b2, *, tff, vmem_limit):
    d_model = x2d.shape[1]
    d_ff_pad = w1.shape[1]
    out2d = pl.pallas_call(
        _ffn_kernel,
        out_shape=jax.ShapeDtypeStruct((M_pad, d_model), x2d.dtype),
        grid_spec=pltpu.PrefetchScalarGridSpec(
            num_scalar_prefetch=0,
            grid=(M_pad // tm, d_ff_pad // tff),
            in_specs=[
                pl.BlockSpec((tm, d_model), lambda i, k: (i, 0)),   # x tile
                pl.BlockSpec((d_model, tff), lambda i, k: (0, k)),  # w1 chunk
                pl.BlockSpec((1, tff), lambda i, k: (0, k)),        # b1 chunk
                pl.BlockSpec((tff, d_model), lambda i, k: (k, 0)),  # w2 chunk
                pl.BlockSpec((1, d_model), lambda i, k: (0, 0)),    # b2
            ],
            out_specs=pl.BlockSpec((tm, d_model), lambda i, k: (i, 0)),
            scratch_shapes=[pltpu.VMEM((tm, d_model), jnp.float32)],
        ),
        compiler_params=pltpu.CompilerParams(
            dimension_semantics=("parallel", "arbitrary"),
            vmem_limit_bytes=vmem_limit,
        ),
    )(x2d, w1, b1.reshape(1, -1), w2, b2.reshape(1, -1))
    return out2d[:M] if M_pad != M else out2d


def _layernorm_kernel(x_ref, a_ref, b_ref, o_ref, *, eps, d):
    x = x_ref[...].astype(jnp.float32)
    mean = jnp.mean(x, axis=-1, keepdims=True)
    xc = x - mean
    std = jnp.sqrt(jnp.sum(xc * xc, axis=-1, keepdims=True) / (d - 1))
    y = a_ref[...].astype(jnp.float32) * xc / (std + eps) + b_ref[...].astype(jnp.float32)
    o_ref[...] = y.astype(o_ref.dtype)


def _layer_norm(x2d, M, M_pad, tm, a2, b2, *, eps):
    d_model = x2d.shape[1]
    out2d = pl.pallas_call(
        functools.partial(_layernorm_kernel, eps=eps, d=d_model),
        out_shape=jax.ShapeDtypeStruct((M_pad, d_model), x2d.dtype),
        grid_spec=pltpu.PrefetchScalarGridSpec(
            num_scalar_prefetch=0,
            grid=(M_pad // tm,),
            in_specs=[
                pl.BlockSpec((tm, d_model), lambda i: (i, 0)),
                pl.BlockSpec((1, d_model), lambda i: (0, 0)),
                pl.BlockSpec((1, d_model), lambda i: (0, 0)),
            ],
            out_specs=pl.BlockSpec((tm, d_model), lambda i: (i, 0)),
        ),
        compiler_params=pltpu.CompilerParams(dimension_semantics=("parallel",)),
    )(x2d, a2.reshape(1, -1), b2.reshape(1, -1))
    return out2d[:M] if M_pad != M else out2d


# ---------------------------------------------------------------------------
# Encoder: N cloned layers + final LayerNorm
# ---------------------------------------------------------------------------
def encoder_forward(x, layer_params, num_layers, ln_a, ln_b, *, eps=1e-6,
                    tm=512, force_tiled=False):
    # TODO(synk): the Encoder's generic `layer` submodule is not defined in the
    # spec; it is instantiated as a position-wise FFN sublayer.  Identical params
    # per layer match clones()' deep-copy-at-init semantics.
    w1, b1, w2, b2 = layer_params
    B, S, d_model = x.shape
    M = B * S
    itemsize = jnp.dtype(x.dtype).itemsize
    align = 16 if itemsize < 4 else 8

    cap = _vmem_capacity_bytes()
    budget = int(cap * 0.7)   # never request full physical VMEM (v7x: ~45 MiB)

    w1p, b1p, w2p, d_ff_pad = _pad_ff(w1, b1, w2)
    tm = _pick_tm(M, itemsize, requested=tm)

    # --- fused path: all layers + LayerNorm in one kernel, weights resident ---
    if not force_tiled and num_layers >= 1:
        tm_f = tm
        while tm_f > 64 and _fused_vmem_bytes(tm_f, d_model, d_ff_pad, itemsize) > budget:
            tm_f = _round_up(max(align, tm_f // 2), align)
        if _fused_vmem_bytes(tm_f, d_model, d_ff_pad, itemsize) <= budget:
            M_pad = _round_up(M, tm_f)
            x2d = _pad_rows(x.reshape(M, d_model), M_pad)
            vmem_limit = min(budget, max(
                _fused_vmem_bytes(tm_f, d_model, d_ff_pad, itemsize), 16 << 20))
            out2d = _encoder_fused(
                x2d, M, M_pad, tm_f, w1p, b1p, w2p, b2, ln_a, ln_b,
                num_layers=num_layers, eps=eps, vmem_limit=vmem_limit)
            return out2d.reshape(B, S, d_model)

    # --- fallback: weights don't fit VMEM -> stream d_ff chunks per layer ---
    M_pad = _round_up(M, tm)
    x2d = _pad_rows(x.reshape(M, d_model), M_pad)
    tff = _pick_tff(d_ff_pad, requested=256 if itemsize >= 4 else 512)
    vmem_limit = min(budget, max(
        _ffn_tiled_vmem_bytes(tm, tff, d_model, itemsize), 16 << 20))
    h2d = x2d
    for _ in range(num_layers):
        h2d = _positionwise_ff_tiled(h2d, M_pad, M_pad, tm, w1p, b1p, w2p, b2,
                                     tff=tff, vmem_limit=vmem_limit)
    out2d = _layer_norm(h2d, M, M_pad, tm, ln_a, ln_b, eps=eps)
    return out2d.reshape(B, S, d_model)


def init_params(key, d_model, d_ff, dtype=jnp.float32):
    """nn.Linear-style init (uniform +-1/sqrt(fan_in)); weights pre-transposed."""
    k1, k2, k3, k4 = jax.random.split(key, 4)
    bound1 = 1.0 / (d_model ** 0.5)
    bound2 = 1.0 / (d_ff ** 0.5)
    w1 = jax.random.uniform(k1, (d_model, d_ff), dtype, -bound1, bound1)
    b1 = jax.random.uniform(k2, (d_ff,), dtype, -bound1, bound1)
    w2 = jax.random.uniform(k3, (d_ff, d_model), dtype, -bound2, bound2)
    b2 = jax.random.uniform(k4, (d_model,), dtype, -bound2, bound2)
    return w1, b1, w2, b2


if __name__ == "__main__":
    key = jax.random.PRNGKey(0)
    kx, kp = jax.random.split(key)

    B, S, d_model, d_ff, N = 2, 8, 128, 256, 2   # lane-dense d_model (mult of 128)
    x = jax.random.normal(kx, (B, S, d_model), jnp.float32)
    w1, b1, w2, b2 = init_params(kp, d_model, d_ff, jnp.float32)
    ln_a = jnp.ones((d_model,), jnp.float32)
    ln_b = jnp.zeros((d_model,), jnp.float32)

    out = encoder_forward(x, (w1, b1, w2, b2), N, ln_a, ln_b)
    out = jax.block_until_ready(out)

    # pure-JAX reference
    ref = x
    for _ in range(N):
        ref = jnp.maximum(ref @ w1 + b1, 0.0) @ w2 + b2
    mean = ref.mean(-1, keepdims=True)
    std = jnp.std(ref, axis=-1, keepdims=True, ddof=1)
    ref = ln_a * (ref - mean) / (std + 1e-6) + ln_b

    assert out.shape == (B, S, d_model)
    assert jnp.allclose(out, ref, atol=1e-4, rtol=1e-3), "fused path mismatch vs reference"

    # exercise the d_ff-streamed fallback path as well and check it agrees
    out_tiled = jax.block_until_ready(
        encoder_forward(x, (w1, b1, w2, b2), N, ln_a, ln_b, force_tiled=True))
    assert jnp.allclose(out_tiled, ref, atol=1e-4, rtol=1e-3), "tiled path mismatch"

    # bf16 smoke test: native-dtype (no-upcast) MXU path + fused LN epilogue
    xb = x.astype(jnp.bfloat16)
    pb = tuple(p.astype(jnp.bfloat16) for p in (w1, b1, w2, b2))
    out_bf16 = jax.block_until_ready(
        encoder_forward(xb, pb, N, ln_a.astype(jnp.bfloat16), ln_b.astype(jnp.bfloat16))
    )
    assert out_bf16.shape == (B, S, d_model)
    assert bool(jnp.all(jnp.isfinite(out_bf16.astype(jnp.float32))))

    print("KERNEL_OK")
</pallas_src>

<mosaic_0001>
module attributes {stable_mosaic.version = 11 : i64} {
  func.func @_encoder_fused_kernel(%arg0: i32, %arg1: memref<16x128xf32, #tpu.memory_space<vmem>>, %arg2: memref<128x256xf32, #tpu.memory_space<vmem>>, %arg3: memref<1x256xf32, #tpu.memory_space<vmem>>, %arg4: memref<256x128xf32, #tpu.memory_space<vmem>>, %arg5: memref<1x128xf32, #tpu.memory_space<vmem>>, %arg6: memref<1x128xf32, #tpu.memory_space<vmem>>, %arg7: memref<1x128xf32, #tpu.memory_space<vmem>>, %arg8: memref<16x128xf32, #tpu.memory_space<vmem>>) attributes {dimension_semantics = [#tpu.dimension_semantics<parallel>], iteration_bounds = array<i64: 1>, scalar_prefetch = 0 : i64, scratch_operands = 0 : i64, tpu.core_type = #tpu.core_type<tc>, window_params = [{transform_indices = @transform_0, window_bounds = array<i64: 16, 128>}, {pipeline_mode = #tpu.pipeline_mode<synchronous>, transform_indices = @transform_1, window_bounds = array<i64: 128, 256>}, {pipeline_mode = #tpu.pipeline_mode<synchronous>, transform_indices = @transform_2, window_bounds = array<i64: 1, 256>}, {pipeline_mode = #tpu.pipeline_mode<synchronous>, transform_indices = @transform_3, window_bounds = array<i64: 256, 128>}, {pipeline_mode = #tpu.pipeline_mode<synchronous>, transform_indices = @transform_4, window_bounds = array<i64: 1, 128>}, {pipeline_mode = #tpu.pipeline_mode<synchronous>, transform_indices = @transform_5, window_bounds = array<i64: 1, 128>}, {pipeline_mode = #tpu.pipeline_mode<synchronous>, transform_indices = @transform_6, window_bounds = array<i64: 1, 128>}, {transform_indices = @transform_7, window_bounds = array<i64: 16, 128>}]} {
    %c0 = arith.constant 0 : index
    %c0_0 = arith.constant 0 : index
    %0 = vector.load %arg1[%c0, %c0_0] : memref<16x128xf32, #tpu.memory_space<vmem>>, vector<16x128xf32>
    %c0_1 = arith.constant 0 : index
    %c0_2 = arith.constant 0 : index
    %1 = vector.load %arg2[%c0_1, %c0_2] : memref<128x256xf32, #tpu.memory_space<vmem>>, vector<128x256xf32>
    %cst = arith.constant dense<0.000000e+00> : vector<16x256xf32>
    %2 = tpu.matmul %0, %1, %cst {dimension_numbers = #tpu.dot_dimension_numbers<[1], [0], [0], [1], [0, 0, 1, 1], [], []>} : vector<16x128xf32>, vector<128x256xf32>, vector<16x256xf32> -> vector<16x256xf32>
    %c0_3 = arith.constant 0 : index
    %c0_4 = arith.constant 0 : index
    %3 = vector.load %arg3[%c0_3, %c0_4] : memref<1x256xf32, #tpu.memory_space<vmem>>, vector<1x256xf32>
    %4 = vector.broadcast %3 : vector<1x256xf32> to vector<16x256xf32>
    %5 = arith.addf %2, %4 : vector<16x256xf32>
    %cst_5 = arith.constant 0.000000e+00 : f32
    %6 = vector.broadcast %cst_5 : f32 to vector<16x256xf32>
    %7 = arith.maximumf %5, %6 : vector<16x256xf32>
    %c0_6 = arith.constant 0 : index
    %c0_7 = arith.constant 0 : index
    %8 = vector.load %arg4[%c0_6, %c0_7] : memref<256x128xf32, #tpu.memory_space<vmem>>, vector<256x128xf32>
    %cst_8 = arith.constant dense<0.000000e+00> : vector<16x128xf32>
    %9 = tpu.matmul %7, %8, %cst_8 {dimension_numbers = #tpu.dot_dimension_numbers<[1], [0], [0], [1], [0, 0, 1, 1], [], []>} : vector<16x256xf32>, vector<256x128xf32>, vector<16x128xf32> -> vector<16x128xf32>
    %c0_9 = arith.constant 0 : index
    %c0_10 = arith.constant 0 : index
    %10 = vector.load %arg5[%c0_9, %c0_10] : memref<1x128xf32, #tpu.memory_space<vmem>>, vector<1x128xf32>
    %11 = vector.broadcast %10 : vector<1x128xf32> to vector<16x128xf32>
    %12 = arith.addf %9, %11 : vector<16x128xf32>
    %c0_11 = arith.constant 0 : index
    %c0_12 = arith.constant 0 : index
    %13 = vector.load %arg2[%c0_11, %c0_12] : memref<128x256xf32, #tpu.memory_space<vmem>>, vector<128x256xf32>
    %cst_13 = arith.constant dense<0.000000e+00> : vector<16x256xf32>
    %14 = tpu.matmul %12, %13, %cst_13 {dimension_numbers = #tpu.dot_dimension_numbers<[1], [0], [0], [1], [0, 0, 1, 1], [], []>} : vector<16x128xf32>, vector<128x256xf32>, vector<16x256xf32> -> vector<16x256xf32>
    %c0_14 = arith.constant 0 : index
    %c0_15 = arith.constant 0 : index
    %15 = vector.load %arg3[%c0_14, %c0_15] : memref<1x256xf32, #tpu.memory_space<vmem>>, vector<1x256xf32>
    %16 = vector.broadcast %15 : vector<1x256xf32> to vector<16x256xf32>
    %17 = arith.addf %14, %16 : vector<16x256xf32>
    %cst_16 = arith.constant 0.000000e+00 : f32
    %18 = vector.broadcast %cst_16 : f32 to vector<16x256xf32>
    %19 = arith.maximumf %17, %18 : vector<16x256xf32>
    %c0_17 = arith.constant 0 : index
    %c0_18 = arith.constant 0 : index
    %20 = vector.load %arg4[%c0_17, %c0_18] : memref<256x128xf32, #tpu.memory_space<vmem>>, vector<256x128xf32>
    %cst_19 = arith.constant dense<0.000000e+00> : vector<16x128xf32>
    %21 = tpu.matmul %19, %20, %cst_19 {dimension_numbers = #tpu.dot_dimension_numbers<[1], [0], [0], [1], [0, 0, 1, 1], [], []>} : vector<16x256xf32>, vector<256x128xf32>, vector<16x128xf32> -> vector<16x128xf32>
    %c0_20 = arith.constant 0 : index
    %c0_21 = arith.constant 0 : index
    %22 = vector.load %arg5[%c0_20, %c0_21] : memref<1x128xf32, #tpu.memory_space<vmem>>, vector<1x128xf32>
    %23 = vector.broadcast %22 : vector<1x128xf32> to vector<16x128xf32>
    %24 = arith.addf %21, %23 : vector<16x128xf32>
    %cst_22 = arith.constant dense<0.000000e+00> : vector<16xf32>
    %25 = vector.multi_reduction <add>, %24, %cst_22 [1] : vector<16x128xf32> to vector<16xf32>
    %26 = vector.shape_cast %25 : vector<16xf32> to vector<16x1xf32>
    %cst_23 = arith.constant 1.280000e+02 : f32
    %27 = vector.broadcast %cst_23 : f32 to vector<16x1xf32>
    %28 = arith.divf %26, %27 : vector<16x1xf32>
    %29 = vector.broadcast %28 : vector<16x1xf32> to vector<16x128xf32>
    %30 = arith.subf %24, %29 : vector<16x128xf32>
    %31 = arith.mulf %30, %30 : vector<16x128xf32>
    %cst_24 = arith.constant dense<0.000000e+00> : vector<16xf32>
    %32 = vector.multi_reduction <add>, %31, %cst_24 [1] : vector<16x128xf32> to vector<16xf32>
    %33 = vector.shape_cast %32 : vector<16xf32> to vector<16x1xf32>
    %cst_25 = arith.constant 1.270000e+02 : f32
    %34 = vector.broadcast %cst_25 : f32 to vector<16x1xf32>
    %35 = arith.divf %33, %34 : vector<16x1xf32>
    %36 = math.sqrt %35 : vector<16x1xf32>
    %c0_26 = arith.constant 0 : index
    %c0_27 = arith.constant 0 : index
    %37 = vector.load %arg6[%c0_26, %c0_27] : memref<1x128xf32, #tpu.memory_space<vmem>>, vector<1x128xf32>
    %38 = vector.broadcast %37 : vector<1x128xf32> to vector<16x128xf32>
    %39 = arith.mulf %38, %30 : vector<16x128xf32>
    %cst_28 = arith.constant 9.99999997E-7 : f32
    %40 = vector.broadcast %cst_28 : f32 to vector<16x1xf32>
    %41 = arith.addf %36, %40 : vector<16x1xf32>
    %42 = vector.broadcast %41 : vector<16x1xf32> to vector<16x128xf32>
    %43 = arith.divf %39, %42 : vector<16x128xf32>
    %c0_29 = arith.constant 0 : index
    %c0_30 = arith.constant 0 : index
    %44 = vector.load %arg7[%c0_29, %c0_30] : memref<1x128xf32, #tpu.memory_space<vmem>>, vector<1x128xf32>
    %45 = vector.broadcast %44 : vector<1x128xf32> to vector<16x128xf32>
    %46 = arith.addf %43, %45 : vector<16x128xf32>
    %c0_31 = arith.constant 0 : index
    %c0_32 = arith.constant 0 : index
    %47 = vector.load %arg8[%c0_31, %c0_32] : memref<16x128xf32, #tpu.memory_space<vmem>>, vector<16x128xf32>
    tpu.vector_store %arg8[%c0_31, %c0_32], %46 {strides = array<i32>} : memref<16x128xf32, #tpu.memory_space<vmem>>, vector<16x128xf32>,
    return
  }
  func.func @transform_0(%arg0: i32) -> (i32, i32) {
    %c0_i32 = arith.constant 0 : i32
    %c0_i32_0 = arith.constant 0 : i32
    return %arg0, %c0_i32 : i32, i32
  }
  func.func @transform_1(%arg0: i32) -> (i32, i32) {
    %c0_i32 = arith.constant 0 : i32
    %c0_i32_0 = arith.constant 0 : i32
    %c0_i32_1 = arith.constant 0 : i32
    return %c0_i32, %c0_i32_0 : i32, i32
  }
  func.func @transform_2(%arg0: i32) -> (i32, i32) {
    %c0_i32 = arith.constant 0 : i32
    %c0_i32_0 = arith.constant 0 : i32
    %c0_i32_1 = arith.constant 0 : i32
    return %c0_i32, %c0_i32_0 : i32, i32
  }
  func.func @transform_3(%arg0: i32) -> (i32, i32) {
    %c0_i32 = arith.constant 0 : i32
    %c0_i32_0 = arith.constant 0 : i32
    %c0_i32_1 = arith.constant 0 : i32
    return %c0_i32, %c0_i32_0 : i32, i32
  }
  func.func @transform_4(%arg0: i32) -> (i32, i32) {
    %c0_i32 = arith.constant 0 : i32
    %c0_i32_0 = arith.constant 0 : i32
    %c0_i32_1 = arith.constant 0 : i32
    return %c0_i32, %c0_i32_0 : i32, i32
  }
  func.func @transform_5(%arg0: i32) -> (i32, i32) {
    %c0_i32 = arith.constant 0 : i32
    %c0_i32_0 = arith.constant 0 : i32
    %c0_i32_1 = arith.constant 0 : i32
    return %c0_i32, %c0_i32_0 : i32, i32
  }
  func.func @transform_6(%arg0: i32) -> (i32, i32) {
    %c0_i32 = arith.constant 0 : i32
    %c0_i32_0 = arith.constant 0 : i32
    %c0_i32_1 = arith.constant 0 : i32
    return %c0_i32, %c0_i32_0 : i32, i32
  }
  func.func @transform_7(%arg0: i32) -> (i32, i32) {
    %c0_i32 = arith.constant 0 : i32
    %c0_i32_0 = arith.constant 0 : i32
    return %arg0, %c0_i32 : i32, i32
  }
}

</mosaic_0001>

<bundles_post_ra>
// kernel: tpu_custom_call.1
= control target key start
LH: loop header
LB: loop body
LE: loop exit
PB: predicated region body
PF: predicated region fallthrough
CT: control target
= control target key end

     0   :  { %12 = vsyncpa [#allocation3], 0  ;;  %s1077_s0 = inlined_call_operand.hbm [shape: f32[16,128], index: 0, kind: input, shape index: {}]   ;;  %s1078_s1 = inlined_call_operand.hbm [shape: f32[128,256], index: 1, kind: input, shape index: {}]   ;;  %s1079_s2 = inlined_call_operand.vmem [shape: f32[1,256], index: 2, kind: input, shape index: {}]   ;;  %s1080_s3 = inlined_call_operand.hbm [shape: f32[256,128], index: 3, kind: input, shape index: {}]   ;;  %s1081_s4 = inlined_call_operand.vmem [shape: f32[1,128], index: 4, kind: input, shape index: {}]   ;;  %s1082_s5 = inlined_call_operand.vmem [shape: f32[1,128], index: 5, kind: input, shape index: {}]   ;;  %s1083_s6 = inlined_call_operand.vmem [shape: f32[1,128], index: 6, kind: input, shape index: {}]   ;;  %s1084_s7 = inlined_call_operand.hbm [shape: f32[16,128], index: 7, kind: output, shape index: {}]  }
   0x1   :  { %13 = vsyncpa [#allocation6], 0 }
   0x2   :  { %14 = vsyncpa [#allocation4], 0  ;;  %s859_s24 = smov [#allocation5]   ;;  %s765_s28 = scalar_lea.hbm %s1078_s1, 4096 }
   0x3   :  { %s32_s25 = sshll.u32 %s859_s24, 4  ;;  %p766_p0 = scmp.ne.s32.totalorder %s1078_s1, %s765_s28  ;;  %s33_s25 = int_to_ptr.vmem [resolvable:$true] %s32_s25 }
   0x4   :  { %p769_p1 = scmp.lt.u32.totalorder %s765_s28, %s1078_s1 }
   0x6   :  { %p771_p2 = pnand %p769_p1, %p766_p0 }
   0x8   :  { %774 = shalt.err (!%p771_p2)
}
   0x9   :  { %s775_s10 = scalar_lea.vmem %s33_s25, 4096  ;;  %p780_p4 = scmp.lt.s32.totalorder %s33_s25, %s33_s25 }
   0xa   :  { %p776_p3 = scmp.ne.s32.totalorder %s33_s25, %s775_s10  ;;  %p781_p5 = scmp.lt.s32.totalorder %s775_s10, %s775_s10 }
   0xc   :  { %p782_p6 = por %p781_p5, %p780_p4 }
   0xe   :  { %p783_p7 = pnand %p782_p6, %p776_p3 }
  0x10   :  { %786 = shalt.err (!%p783_p7)
}
  0x11   :  { %s860_s11 = smov 256   ;;  %s861_s12 = smov 16  }
  0x12   :  { %38 = dma.hbm_to_vmem [thread:$0]  %s1078_s1, 4096, %s33_s25, [#allocation6], %s860_s11, %s860_s11, %s861_s12  }
  0x13   :  { %s862_s15 = smov [#allocation2]   ;;  %s787_s19 = scalar_lea.hbm %s1077_s0, 256 }
  0x14   :  { %s20_s16 = sshll.u32 %s862_s15, 4  ;;  %p788_p8 = scmp.ne.s32.totalorder %s1077_s0, %s787_s19  ;;  %s21_s16 = int_to_ptr.vmem [resolvable:$true] %s20_s16 }
  0x15   :  { %p791_p9 = scmp.lt.u32.totalorder %s787_s19, %s1077_s0 }
  0x17   :  { %p793_p10 = pnand %p791_p9, %p788_p8 }
  0x19   :  { %796 = shalt.err (!%p793_p10)
}
  0x1a   :  { %s797_s24 = scalar_lea.vmem %s21_s16, 256  ;;  %p802_p12 = scmp.lt.s32.totalorder %s21_s16, %s21_s16 }
  0x1b   :  { %p798_p11 = scmp.ne.s32.totalorder %s21_s16, %s797_s24  ;;  %p803_p13 = scmp.lt.s32.totalorder %s797_s24, %s797_s24 }
  0x1d   :  { %p804_p0 = por %p803_p13, %p802_p12 }
  0x1f   :  { %p805_p1 = pnand %p804_p0, %p798_p11 }
  0x21   :  { %808 = shalt.err (!%p805_p1)
}
  0x22   :  { %s863_s1 = smov 128   ;;  %s864_s25 = smov 8  }
  0x23   :  { %26 = dma.hbm_to_vmem [thread:$0]  %s1077_s0, 256, %s21_s16, [#allocation3], %s863_s1, %s863_s1, %s864_s25  }
  0x24   :  { %s865_s28 = smov [#allocation7]   ;;  %s809_s9 = scalar_lea.hbm %s1080_s3, 4096 }
  0x25   :  { %s46_s29 = sshll.u32 %s865_s28, 4  ;;  %p810_p2 = scmp.ne.s32.totalorder %s1080_s3, %s809_s9  ;;  %s47_s29 = int_to_ptr.vmem [resolvable:$true] %s46_s29 }
  0x26   :  { %p813_p3 = scmp.lt.u32.totalorder %s809_s9, %s1080_s3 }
  0x28   :  { %p815_p4 = pnand %p813_p3, %p810_p2 }
  0x2a   :  { %818 = shalt.err (!%p815_p4)
}
  0x2b   :  { %s819_s14 = scalar_lea.vmem %s47_s29, 4096  ;;  %p824_p6 = scmp.lt.s32.totalorder %s47_s29, %s47_s29 }
  0x2c   :  { %p820_p5 = scmp.ne.s32.totalorder %s47_s29, %s819_s14  ;;  %p825_p7 = scmp.lt.s32.totalorder %s819_s14, %s819_s14 }
  0x2e   :  { %p826_p8 = por %p825_p7, %p824_p6 }
  0x30   :  { %p827_p9 = pnand %p826_p8, %p820_p5 }
  0x32   :  { %830 = shalt.err (!%p827_p9)
}
  0x33   :  { %52 = dma.hbm_to_vmem [thread:$0]  %s1080_s3, 4096, %s47_s29, [#allocation6], %s863_s1, %s863_s1, %s864_s25  }
  0x34   :  { %853 = dma.done.wait [#allocation3], 256  }
  0x35   :  { %854 = vsyncadd [#allocation3], 4294967040 }
  0x36   :  { %855 = dma.done.wait [#allocation6], 8192  }
  0x37   :  { %856 = vsyncadd [#allocation6], 4294959104  ;;  %v866_v0 = vmov 0.0   ;;  %v71_v1 = vld [vmem:[#allocation5 + $0x8] sm:$0xff]  ;;  %v73_v2 = vld [vmem:[#allocation5 + $0x18] sm:$0xff]  ;;  %s867_s21 = smov [#allocation8]  }
  0x38   :  { %178 = vmatprep.mubr.f32.mxu0 %v866_v0  ;;  %v70_v3 = vld [vmem:[#allocation5] sm:$0xff]  ;;  %v951_v4 = vpack.c.bf16 %v73_v2, %v71_v1  ;;  %v72_v5 = vld [vmem:[#allocation5 + $0x10] sm:$0xff]  ;;  %v75_v6 = vld [vmem:[#allocation5 + $0x28] sm:$0xff]  ;;  %s528_s22 = sshll.u32 %s867_s21, 4  ;;  %s529_s22 = int_to_ptr.vmem [resolvable:$true] %s528_s22 }
  0x39   :  { %v77_v7 = vld [vmem:[#allocation5 + $0x38] sm:$0xff]  ;;  %v953_v8 = vpack.c.bf16 %v72_v5, %v70_v3  ;;  %v74_v10 = vld [vmem:[#allocation5 + $0x20] sm:$0xff]  ;;  %v76_v11 = vld [vmem:[#allocation5 + $0x30] sm:$0xff]  ;;  %s831_s23 = scalar_lea.vmem %s529_s22, 256  ;;  %p836_p11 = scmp.lt.s32.totalorder %s529_s22, %s529_s22 }
  0x3a   :  { %v955_v9 = vpack.c.bf16 %v77_v7, %v75_v6  ;;  %v79_v12 = vld [vmem:[#allocation5 + $0x48] sm:$0xff]  ;;  %621 = vmatprep.subr.bf16.mxu0 %v951_v4  ;;  %v81_v13 = vld [vmem:[#allocation5 + $0x58] sm:$0xff]  ;;  %v959_v14 = vpack.c.bf16 %v76_v11, %v74_v10  ;;  %v78_v16 = vld [vmem:[#allocation5 + $0x40] sm:$0xff]  ;;  %p832_p10 = scmp.ne.s32.totalorder %s529_s22, %s831_s23  ;;  %p837_p12 = scmp.lt.s32.totalorder %s831_s23, %s831_s23 }
  0x3b   :  { %623 = vmatpush1.bf16.msra.mxu0 %v953_v8  ;;  %v962_v15 = vpack.c.bf16 %v81_v13, %v79_v12  ;;  %v80_v17 = vld [vmem:[#allocation5 + $0x50] sm:$0xff]  ;;  %v83_v18 = vld [vmem:[#allocation5 + $0x68] sm:$0xff]  ;;  %v85_v19 = vld [vmem:[#allocation5 + $0x78] sm:$0xff] }
  0x3c   :  { %625 = vmatprep.subr.bf16.mxu0 %v955_v9  ;;  %v965_v20 = vpack.c.bf16 %v80_v17, %v78_v16  ;;  %v968_v21 = vpack.c.bf16 %v85_v19, %v83_v18  ;;  %v82_v22 = vld [vmem:[#allocation5 + $0x60] sm:$0xff]  ;;  %v84_v23 = vld [vmem:[#allocation5 + $0x70] sm:$0xff]  ;;  %v87_v24 = vld [vmem:[#allocation5 + $0x88] sm:$0xff]  ;;  %p838_p13 = por %p837_p12, %p836_p11 }
  0x3d   :  { %v89_v25 = vld [vmem:[#allocation5 + $0x98] sm:$0xff]  ;;  %v86_v26 = vld [vmem:[#allocation5 + $0x80] sm:$0xff]  ;;  %v88_v27 = vld [vmem:[#allocation5 + $0x90] sm:$0xff]  ;;  %v971_v30 = vpack.c.bf16 %v84_v23, %v82_v22 }
  0x3e   :  { %v211_v28 = vld [vmem:[#allocation7 + $0x80] sm:$0xff]  ;;  %v212_v29 = vld [vmem:[#allocation7 + $0x88] sm:$0xff]  ;;  %v213_v35 = vld [vmem:[#allocation7 + $0x90] sm:$0xff]  ;;  %v976_v36 = vpack.c.bf16 %v89_v25, %v87_v24  ;;  %v987_v46 = vpack.c.bf16 %v88_v27, %v86_v26  ;;  %p839_p0 = pnand %p838_p13, %p832_p10 }
  0x3f   :  { %627 = vmatpush1.bf16.msra.mxu0 %v959_v14  ;;  %v91_v31 = vld [vmem:[#allocation5 + $0xa8] sm:$0xff]  ;;  %v973_v32 = vpack.c.bf16 %v212_v29, %v211_v28  ;;  %v195_v33 = vld [vmem:[#allocation7] sm:$0xff]  ;;  %v214_v38 = vld [vmem:[#allocation7 + $0x98] sm:$0xff] }
  0x40   :  { %629 = vmatprep.subr.bf16.mxu0 %v962_v15  ;;  %v196_v34 = vld [vmem:[#allocation7 + $0x8] sm:$0xff]  ;;  %v197_v39 = vld [vmem:[#allocation7 + $0x10] sm:$0xff]  ;;  %v198_v40 = vld [vmem:[#allocation7 + $0x18] sm:$0xff]  ;;  %v981_v42 = vpack.c.bf16 %v214_v38, %v213_v35 }
  0x41   :  { %v978_v37 = vpack.c.bf16 %v196_v34, %v195_v33  ;;  %v93_v41 = vld [vmem:[#allocation5 + $0xb8] sm:$0xff]  ;;  %653 = vmatprep.subr.bf16.mxu1 %v973_v32  ;;  %v215_v43 = vld [vmem:[#allocation7 + $0xa0] sm:$0xff]  ;;  %v216_v44 = vld [vmem:[#allocation7 + $0xa8] sm:$0xff]  ;;  %v984_v45 = vpack.c.bf16 %v198_v40, %v197_v39 }
  0x42   :  { %v90_v47 = vld [vmem:[#allocation5 + $0xa0] sm:$0xff]  ;;  %v990_v48 = vpack.c.bf16 %v216_v44, %v215_v43  ;;  %v200_v50 = vld [vmem:[#allocation7 + $0x28] sm:$0xff]  ;;  %v993_v51 = vpack.c.bf16 %v93_v41, %v91_v31  ;;  %v92_v52 = vld [vmem:[#allocation5 + $0xb0] sm:$0xff] }
  0x43   :  { %631 = vmatpush1.bf16.msra.mxu0 %v965_v20  ;;  %655 = vmatpush3.bf16.msra.mxu1 %v978_v37  ;;  %v199_v49 = vld [vmem:[#allocation7 + $0x20] sm:$0xff]  ;;  %v217_v53 = vld [vmem:[#allocation7 + $0xb0] sm:$0xff]  ;;  %v218_v54 = vld [vmem:[#allocation7 + $0xb8] sm:$0xff]  ;;  %v642_v58 = vpack.c.bf16 %v92_v52, %v90_v47 }
  0x44   :  { %633 = vmatprep.subr.bf16.mxu0 %v968_v21  ;;  %657 = vmatprep.subr.bf16.mxu1 %v981_v42  ;;  %v95_v55 = vld [vmem:[#allocation5 + $0xc8] sm:$0xff]  ;;  %v97_v56 = vld [vmem:[#allocation5 + $0xd8] sm:$0xff]  ;;  %v996_v57 = vpack.c.bf16 %v200_v50, %v199_v49  ;;  %v94_v59 = vld [vmem:[#allocation5 + $0xc0] sm:$0xff]  ;;  %v1000_v60 = vpack.c.bf16 %v218_v54, %v217_v53 }
  0x45   :  { %v201_v61 = vld [vmem:[#allocation7 + $0x30] sm:$0xff]  ;;  %v202_v62 = vld [vmem:[#allocation7 + $0x38] sm:$0xff]  ;;  %v644_v63 = vpack.c.bf16 %v97_v56, %v95_v55  ;;  %v219_v2 = vld [vmem:[#allocation7 + $0xc0] sm:$0xff] }
  0x46   :  { %v96_v1 = vld [vmem:[#allocation5 + $0xd0] sm:$0xff]  ;;  %v220_v3 = vld [vmem:[#allocation7 + $0xc8] sm:$0xff]  ;;  %v101_v6 = vld [vmem:[#allocation5 + $0xf8] sm:$0xff]  ;;  %v1004_v7 = vpack.c.bf16 %v202_v62, %v201_v61 }
  0x47   :  { %635 = vmatpush1.bf16.msra.mxu0 %v971_v30  ;;  %659 = vmatpush3.bf16.msra.mxu1 %v984_v45  ;;  %v99_v5 = vld [vmem:[#allocation5 + $0xe8] sm:$0xff]  ;;  %v646_v10 = vpack.c.bf16 %v96_v1, %v94_v59  ;;  %v98_v11 = vld [vmem:[#allocation5 + $0xe0] sm:$0xff]  ;;  %v1007_v12 = vpack.c.bf16 %v220_v3, %v219_v2  ;;  %v100_v18 = vld [vmem:[#allocation5 + $0xf0] sm:$0xff] }
  0x48   :  { %637 = vmatprep.subr.bf16.mxu0 %v976_v36  ;;  %661 = vmatprep.subr.bf16.mxu1 %v990_v48  ;;  %v203_v13 = vld [vmem:[#allocation7 + $0x40] sm:$0xff]  ;;  %v204_v16 = vld [vmem:[#allocation7 + $0x48] sm:$0xff]  ;;  %v648_v17 = vpack.c.bf16 %v101_v6, %v99_v5  ;;  %v221_v19 = vld [vmem:[#allocation7 + $0xd0] sm:$0xff]  ;;  %v650_v24 = vpack.c.bf16 %v100_v18, %v98_v11 }
  0x49   :  { %v222_v22 = vld [vmem:[#allocation7 + $0xd8] sm:$0xff]  ;;  %v1010_v23 = vpack.c.bf16 %v204_v16, %v203_v13  ;;  %v205_v26 = vld [vmem:[#allocation7 + $0x50] sm:$0xff]  ;;  %v223_v28 = vld [vmem:[#allocation7 + $0xe0] sm:$0xff] }
  0x4a   :  { %v1013_v25 = vpack.c.bf16 %v222_v22, %v221_v19  ;;  %v206_v27 = vld [vmem:[#allocation7 + $0x58] sm:$0xff]  ;;  %v224_v29 = vld [vmem:[#allocation7 + $0xe8] sm:$0xff]  ;;  %v68_v33 = vld [vmem:[#allocation2] sm:$0xff] }
  0x4b   :  { %639 = vmatpush1.bf16.msra.mxu0 %v987_v46  ;;  %663 = vmatpush3.bf16.msra.mxu1 %v996_v57  ;;  %v1016_v31 = vpack.c.bf16 %v206_v27, %v205_v26  ;;  %v1019_v34 = vpack.c.bf16 %v224_v29, %v223_v28  ;;  %v69_v35 = vld [vmem:[#allocation2 + $0x8] sm:$0xff]  ;;  %v102_v41 = vld [vmem:[%s1079_s2] sm:$0x3] }
  0x4c   :  { %641 = vmatprep.subr.bf16.mxu0 %v993_v51  ;;  %665 = vmatprep.subr.bf16.mxu1 %v1000_v60 }
  0x4f   :  { %643 = vmatpush1.bf16.msra.mxu0 %v642_v58  ;;  %667 = vmatpush3.bf16.msra.mxu1 %v1004_v7 }
  0x50   :  { %645 = vmatprep.subr.bf16.mxu0 %v644_v63  ;;  %669 = vmatprep.subr.bf16.mxu1 %v1007_v12 }
  0x53   :  { %647 = vmatpush1.bf16.msra.mxu0 %v646_v10  ;;  %671 = vmatpush3.bf16.msra.mxu1 %v1010_v23 }
  0x54   :  { %649 = vmatprep.subr.bf16.mxu0 %v648_v17  ;;  %673 = vmatprep.subr.bf16.mxu1 %v1013_v25 }
  0x57   :  { %651 = vmatpush1.bf16.msra.mxu0 %v650_v24  ;;  %675 = vmatpush3.bf16.msra.mxu1 %v1016_v31 }
  0x58   :  { %685 = vmatprep.subr.bf16.mxu0 %v951_v4  ;;  %677 = vmatprep.subr.bf16.mxu1 %v1019_v34  ;;  %v207_v4 = vld [vmem:[#allocation7 + $0x60] sm:$0xff] }
  0x5a   :  { %179 = vmatmul.mubr.f32.vlgmr.msra.gmra.mrb[0].mxu0 %v68_v33 }
  0x5b   :  { %184 = vmatprep.mubr.f32.mxu0 %v866_v0  ;;  %687 = vmatpush1.bf16.msra.mxu0 %v953_v8  ;;  %v208_v8 = vld [vmem:[#allocation7 + $0x68] sm:$0xff] }
  0x5c   :  { %689 = vmatprep.subr.bf16.mxu0 %v955_v9  ;;  %v678_v9 = vpack.c.bf16 %v208_v8, %v207_v4 }
  0x5e   :  { %185 = vmatmul.mubr.f32.gmra.mrb[2].mxu0 %v69_v35  ;;  %679 = vmatpush3.bf16.msra.mxu1 %v678_v9 }
  0x5f   :  { %373 = vmatprep.mubr.f32.mxu0 %v866_v0  ;;  %691 = vmatpush1.bf16.msra.mxu0 %v959_v14  ;;  %v225_v14 = vld [vmem:[#allocation7 + $0xf0] sm:$0xff] }
  0x60   :  { %693 = vmatprep.subr.bf16.mxu0 %v962_v15  ;;  %v226_v15 = vld [vmem:[#allocation7 + $0xf8] sm:$0xff] }
  0x63   :  { %695 = vmatpush1.bf16.msra.mxu0 %v965_v20  ;;  %v680_v20 = vpack.c.bf16 %v226_v15, %v225_v14 }
  0x64   :  { %697 = vmatprep.subr.bf16.mxu0 %v968_v21  ;;  %v209_v21 = vld [vmem:[#allocation7 + $0x70] sm:$0xff] }
  0x65   :  { %681 = vmatprep.subr.bf16.mxu1 %v680_v20 }
  0x67   :  { %699 = vmatpush1.bf16.msra.mxu0 %v971_v30  ;;  %v210_v30 = vld [vmem:[#allocation7 + $0x78] sm:$0xff] }
  0x68   :  { %701 = vmatprep.subr.bf16.mxu0 %v976_v36  ;;  %v682_v38 = vpack.c.bf16 %v210_v30, %v209_v21  ;;  %v104_v36 = vlaneseq }
  0x6a   :  { %683 = vmatpush3.bf16.msra.mxu1 %v682_v38  ;;  %v105_v39 = vshrl.u32 %v104_v36, 7 }
  0x6b   :  { %703 = vmatpush1.bf16.msra.mxu0 %v987_v46  ;;  %717 = vmatprep.subr.bf16.mxu1 %v973_v32 }
  0x6c   :  { %705 = vmatprep.subr.bf16.mxu0 %v993_v51  ;;  %v106_v40 = vsub.s32 0, %v105_v39  ;;  %v110_v43 = vsub.s32 1, %v105_v39 }
  0x6e   :  { %v107_v44 = vrot.slane %v102_v41, %v106_v40  ;;  %v111_v46 = vrot.slane %v102_v41, %v110_v43 }
  0x6f   :  { %707 = vmatpush1.bf16.msra.mxu0 %v642_v58 }
  0x70   :  { %709 = vmatprep.subr.bf16.mxu0 %v644_v63 }
  0x73   :  { %711 = vmatpush1.bf16.msra.mxu0 %v646_v10 }
  0x74   :  { %713 = vmatprep.subr.bf16.mxu0 %v648_v17 }
  0x77   :  { %715 = vmatpush1.bf16.msra.mxu0 %v650_v24 }
 0x12d   :  { %v180_v47 = vpop.f32.mrb[0].mxu0 }
 0x12e   :  { %v181_v49 = vadd.f32 %v180_v47, %v107_v44  ;;  %v182_v50 = vpop.f32.mrb[1].mxu0 }
 0x12f   :  { %v183_v51 = vadd.f32 %v182_v50, %v111_v46 }
 0x130   :  { %v191_v54 = vmax.f32 %v181_v49, 0.0  ;;  %v542_v49 = vld [vmem:[%s1082_s5] ss:$0 sm:$0xff] }
 0x131   :  { %v186_v52 = vpop.f32.mrb[2].mxu0  ;;  %v192_v53 = vmax.f32 %v183_v51, 0.0 }
 0x132   :  { %v187_v55 = vadd.f32 %v186_v52, %v107_v44  ;;  %v188_v56 = vpop.f32.mrb[3].mxu0  ;;  %v543_v52 = vld [vmem:[%s1083_s6] ss:$0 sm:$0xff] }
 0x133   :  { %v189_v32 = vadd.f32 %v188_v56, %v111_v46  ;;  %298 = vmatprep.mubr.f32.mxu1 %v192_v53 }
 0x134   :  { %299 = vmatmul.mubr.f32.vlgmr.msra.gmra.mrb[0].mxu1 %v191_v54  ;;  %v193_v59 = vmax.f32 %v187_v55, 0.0 }
 0x135   :  { %v194_v58 = vmax.f32 %v189_v32, 0.0  ;;  %719 = vmatpush3.bf16.msra.mxu1 %v978_v37 }
 0x136   :  { %721 = vmatprep.subr.bf16.mxu1 %v981_v42  ;;  %v541_v42 = vld [vmem:[%s1081_s4] ss:$0 sm:$0xff] }
 0x137   :  { %303 = vmatprep.mubr.f32.mxu1 %v194_v58 }
 0x138   :  { %304 = vmatmul.mubr.f32.gmra.mrb[2].mxu1 %v193_v59 }
 0x139   :  { %723 = vmatpush3.bf16.msra.mxu1 %v984_v45 }
 0x13a   :  { %725 = vmatprep.subr.bf16.mxu1 %v990_v48 }
 0x13d   :  { %727 = vmatpush3.bf16.msra.mxu1 %v996_v57 }
 0x13e   :  { %729 = vmatprep.subr.bf16.mxu1 %v1000_v60 }
 0x141   :  { %731 = vmatpush3.bf16.msra.mxu1 %v1004_v7 }
 0x142   :  { %733 = vmatprep.subr.bf16.mxu1 %v1007_v12 }
 0x145   :  { %735 = vmatpush3.bf16.msra.mxu1 %v1010_v23 }
 0x146   :  { %737 = vmatprep.subr.bf16.mxu1 %v1013_v25 }
 0x149   :  { %739 = vmatpush3.bf16.msra.mxu1 %v1016_v31 }
 0x14a   :  { %741 = vmatprep.subr.bf16.mxu1 %v1019_v34 }
 0x14d   :  { %743 = vmatpush3.bf16.msra.mxu1 %v678_v9 }
 0x14e   :  { %745 = vmatprep.subr.bf16.mxu1 %v680_v20 }
 0x151   :  { %747 = vmatpush3.bf16.msra.mxu1 %v682_v38 }
 0x207   :  { %v576_v37 = vpop.f32.mrb[0].mxu1 }
 0x208   :  { %v577_v45 = vpop.f32.mrb[1].mxu1 }
 0x209   :  { %v578_v48 = vadd.f32 %v577_v45, %v576_v37 }
 0x20b   :  { %v301_v57 = vadd.f32 %v578_v48, %v541_v42  ;;  %v579_v60 = vpop.f32.mrb[2].mxu1 }
 0x20c   :  { %v580_v61 = vpop.f32.mrb[3].mxu1 }
 0x20d   :  { %v581_v62 = vadd.f32 %v580_v61, %v579_v60  ;;  %374 = vmatmul.mubr.f32.vlgmr.msra.gmra.mrb[4].mxu0 %v301_v57 }
 0x20e   :  { %379 = vmatprep.mubr.f32.mxu0 %v866_v0 }
 0x20f   :  { %v306_v63 = vadd.f32 %v581_v62, %v541_v42 }
 0x211   :  { %380 = vmatmul.mubr.f32.gmra.mrb[6].mxu0 %v306_v63 }
 0x2e0   :  { %v375_v1 = vpop.f32.mrb[4].mxu0 }
 0x2e1   :  { %v376_v2 = vadd.f32 %v375_v1, %v107_v44  ;;  %v377_v3 = vpop.f32.mrb[5].mxu0 }
 0x2e2   :  { %v378_v5 = vadd.f32 %v377_v3, %v111_v46 }
 0x2e3   :  { %v386_v10 = vmax.f32 %v376_v2, 0.0 }
 0x2e4   :  { %v387_v6 = vmax.f32 %v378_v5, 0.0  ;;  %v381_v7 = vpop.f32.mrb[6].mxu0 }
 0x2e5   :  { %v382_v11 = vadd.f32 %v381_v7, %v107_v44  ;;  %v383_v12 = vpop.f32.mrb[7].mxu0 }
 0x2e6   :  { %v384_v13 = vadd.f32 %v383_v12, %v111_v46  ;;  %454 = vmatprep.mubr.f32.mxu1 %v387_v6 }
 0x2e7   :  { %455 = vmatmul.mubr.f32.vlgmr.msra.gmra.mrb[4].mxu1 %v386_v10  ;;  %v388_v17 = vmax.f32 %v382_v11, 0.0 }
 0x2e8   :  { %v389_v16 = vmax.f32 %v384_v13, 0.0 }
 0x2ea   :  { %459 = vmatprep.mubr.f32.mxu1 %v389_v16 }
 0x2eb   :  { %460 = vmatmul.mubr.f32.gmra.mrb[6].mxu1 %v388_v17 }
 0x3ba   :  { %v614_v18 = vpop.f32.mrb[4].mxu1 }
 0x3bb   :  { %v615_v0 = vpop.f32.mrb[5].mxu1 }
 0x3bc   :  { %v616_v19 = vadd.f32 %v615_v0, %v614_v18 }
 0x3be   :  { %v617_v22 = vpop.f32.mrb[6].mxu1  ;;  %v457_v23 = vadd.f32 %v616_v19, %v541_v42 }
 0x3bf   :  { %v618_v24 = vpop.f32.mrb[7].mxu1 }
 0x3c0   :  { %v619_v25 = vadd.f32 %v618_v24, %v617_v22  ;;  %465 = vadd.xlane.f32.xlu0 %v457_v23 }
 0x3c2   :  { %v462_v26 = vadd.f32 %v619_v25, %v541_v42 }
 0x3c4   :  { %467 = vadd.xlane.f32.xlu0 %v462_v26 }
 0x44d   :  { %v466_v27 = vpop.xlane.xlu0 %465 }
 0x44e   :  { %v470_v28 = vmul.f32 0.0078125, %v466_v27 }
 0x450   :  { %v472_v29 = vsub.f32 %v457_v23, %v470_v28 }
 0x451   :  { %v468_v31 = vpop.xlane.xlu0 %467 }
 0x452   :  { %v471_v33 = vmul.f32 0.0078125, %v468_v31  ;;  %v474_v34 = vmul.f32 %v472_v29, %v472_v29  ;;  %v504_v50 = vmul.f32 %v542_v49, %v472_v29 }
 0x454   :  { %v473_v35 = vsub.f32 %v462_v26, %v471_v33  ;;  %476 = vadd.xlane.f32.xlu1 %v474_v34 }
 0x456   :  { %v475_v4 = vmul.f32 %v473_v35, %v473_v35  ;;  %v505_v54 = vmul.f32 %v542_v49, %v473_v35 }
 0x458   :  { %478 = vadd.xlane.f32.xlu1 %v475_v4 }
 0x4e1   :  { %v477_v8 = vpop.xlane.xlu1 %476 }
 0x4e2   :  { %v481_v9 = vmul.f32 0.007874016, %v477_v8 }
 0x4e4   :  { %757 = vrsqrt.f32 %v481_v9  ;;  %vm485_vm0 = vcmp.eq.f32.partialorder %v481_v9, inf  ;;  %v488_v30 = vand.u32 2147483648, %v481_v9  ;;  %vm487_vm1 = vcmp.eq.f32.partialorder %v481_v9, 0.0 }
 0x4e5   :  { %v479_v14 = vpop.xlane.xlu1 %478 }
 0x4e6   :  { %v482_v15 = vmul.f32 0.007874016, %v479_v14 }
 0x4e8   :  { %759 = vrsqrt.f32 %v482_v15  ;;  %vm492_vm2 = vcmp.eq.f32.partialorder %v482_v15, inf  ;;  %v495_v43 = vand.u32 2147483648, %v482_v15  ;;  %vm494_vm3 = vcmp.eq.f32.partialorder %v482_v15, 0.0 }
 0x4ee   :  { %v758_v20 = vpop.eup %757 }
 0x4ef   :  { %v484_v21 = vmul.f32 %v758_v20, %v481_v9 }
 0x4f1   :  { %v486_v38 = vsel %vm485_vm0, %v481_v9, %v484_v21 }
 0x4f2   :  { %v760_v36 = vpop.eup %759  ;;  %v489_v39 = vsel %vm487_vm1, %v488_v30, %v486_v38 }
 0x4f3   :  { %v491_v40 = vmul.f32 %v760_v36, %v482_v15  ;;  %v506_v41 = vadd.f32 1e-06, %v489_v39 }
 0x4f5   :  { %v493_v44 = vsel %vm492_vm2, %v482_v15, %v491_v40  ;;  %761 = vrcp.f32 %v506_v41 }
 0x4f6   :  { %v496_v46 = vsel %vm494_vm3, %v495_v43, %v493_v44 }
 0x4f7   :  { %v507_v47 = vadd.f32 1e-06, %v496_v46 }
 0x4f9   :  { %763 = vrcp.f32 %v507_v47 }
 0x4ff   :  { %v762_v51 = vpop.eup %761 }
 0x500   :  { %v509_v53 = vmul.f32 %v762_v51, %v504_v50 }
 0x502   :  { %v519_v55 = vadd.f32 %v543_v52, %v509_v53 }
 0x503   :  { %v764_v56 = vpop.eup %763 }
 0x504   :  { %v511_v32 = vmul.f32 %v764_v56, %v505_v54  ;;  %521 = vst [vmem:[#allocation8] sm:$0xff] %v519_v55 }
 0x506   :  { %v520_v58 = vadd.f32 %v543_v52, %v511_v32 }
 0x508   :  { %522 = vst [vmem:[#allocation8 + $0x8] sm:$0xff] %v520_v58 }
 0x509   :  { %842 = shalt.err (!%p839_p0)
}
 0x50a   :  { %s843_s24 = scalar_lea.hbm %s1084_s7, 256 }
 0x50b   :  { %p844_p1 = scmp.ne.s32.totalorder %s1084_s7, %s843_s24  ;;  %p847_p2 = scmp.lt.u32.totalorder %s843_s24, %s1084_s7 }
 0x50d   :  { %p849_p3 = pnand %p847_p2, %p844_p1 }
 0x50f   :  { %852 = shalt.err (!%p849_p3)
}
 0x510   :  { %534 = dma.vmem_to_hbm [thread:$0]  %s529_s22, 256, %s1084_s7, [#allocation4], %s863_s1, %s863_s1, %s864_s25  }
 0x511   :  { %857 = dma.done.wait [#allocation4], 256  }
 0x512   :  { %858 = vsyncadd [#allocation4], 4294967040 }
 0x513   :  { %538 = vsyncpa [#allocation3], 1 }
 0x514   :  { %539 = vsyncpa [#allocation6], 1 }
 0x515   :  { %540 = vsyncpa [#allocation4], 1 }

</bundles_post_ra>
